<compile_context>
chip_gen: v7x
topology: tpu7x:2x2x1
jax: 0.10.0
libtpu: 0.0.40
codegen_flags: <defaults>
</compile_context>

<pallas_src>
import jax
import jax.numpy as jnp
from jax.experimental import pallas as pl
from jax.experimental.pallas import tpu as pltpu

LANES = 128


def _round_up(x, m):
    return ((x + m - 1) // m) * m


def _packed_affine_kernel(coef_ref, b_ref, x_ref, o_ref):
    # coef_ref: (2C-1, 128*C) f32, b_ref: (1, 128*C) f32  (resident; DMA'd once)
    # x_ref / o_ref: (tr, 128*C) blocks -- 128 consecutive points packed per
    # row, channels interleaved along lanes with period C.
    n_sh = coef_ref.shape[0]            # 2C - 1 (static)
    c = (n_sh + 1) // 2                 # C
    width = x_ref.shape[1]              # 128 * C
    x = x_ref[...].astype(jnp.float32)

    # s = 0 term + bias.
    acc = x * coef_ref[c - 1:c, :] + b_ref[...]
    # Shifted terms: output lane p needs input lanes p+s, s in [-(C-1), C-1].
    # Coefficients are zero wherever a shift would cross a point boundary, so
    # the roll wrap-around lanes never contaminate valid results.
    for si in range(n_sh):
        s = si - (c - 1)
        if s == 0:
            continue
        x_sh = pltpu.roll(x, shift=(-s) % width, axis=1)   # x_sh[:, p] = x[:, p+s]
        acc = acc + x_sh * coef_ref[si:si + 1, :]
    o_ref[...] = acc.astype(o_ref.dtype)


def mlp_forward(x, w1, b1, w2, b2, *, tr_max=2048):
    """x: (B, N, C) float32. Same math as the PyTorch MLP.forward
    (fc1 -> fc2 -> [..., :3]); bn1 is defined but unused in forward."""
    B, N, C = x.shape
    M = B * N
    out_size = w2.shape[0]
    keep = min(out_size, 3)             # fold the trailing [..., :3] into the weights

    # fc1 -> fc2 with no nonlinearity in between collapses to one affine map
    # (f32 rounding differs negligibly from two sequential matmuls).
    w_eff = (w2 @ w1)[:keep].astype(jnp.float32)          # (keep, C)
    b_eff = (w2 @ b1 + b2)[:keep].astype(jnp.float32)     # (keep,)

    if keep != C:
        # TODO(synk): keep != input_size would need the kron-packed MXU-dot
        # variant; the reference module is 3 -> 10 -> 3 with keep == C == 3.
        raise NotImplementedError("packed kernel assumes keep == input_size")

    # Lane-dense packing with NO transpose and NO sublane padding: 128
    # consecutive points share one packed row of width 128*C (a free reshape
    # of the contiguous (M, C) buffer).  Only a small tail pad if M % 128 != 0.
    G = pl.cdiv(M, LANES)
    Mp = G * LANES
    x2d = x.reshape(M, C)
    if Mp != M:
        x2d = jnp.pad(x2d, ((0, Mp - M), (0, 0)))
    x_packed = x2d.reshape(G, LANES * C)

    # Per-lane coefficient table: coef[s + (C-1), p] = w_eff[p % C, p % C + s],
    # zero when the shifted channel falls outside [0, C).
    o_idx = jnp.arange(LANES * C) % C
    shifts = list(range(-(C - 1), C))
    coef = jnp.stack([
        jnp.where((o_idx + s >= 0) & (o_idx + s < C),
                  w_eff[o_idx, jnp.clip(o_idx + s, 0, C - 1)],
                  0.0).astype(jnp.float32)
        for s in shifts
    ])                                                    # (2C-1, 128*C)
    b_packed = jnp.tile(b_eff, LANES).reshape(1, LANES * keep)

    # Row-group tile: large enough to amortize the ~0.35us/step grid overhead,
    # small enough that double-buffered in+out blocks stay ~12 MiB (fits the
    # scoped-VMEM budget on v5e/v6e/v7x); >= 2 steps when possible so the v7x
    # megacore can split the grid across both TensorCores.
    if G <= 8:
        tr = G                                            # single full-extent block
    else:
        tr = min(tr_max, _round_up(pl.cdiv(G, 2), 8))
    grid = (pl.cdiv(G, tr),)

    y_packed = pl.pallas_call(
        _packed_affine_kernel,
        out_shape=jax.ShapeDtypeStruct((G, LANES * keep), x.dtype),
        grid=grid,
        in_specs=[
            pl.BlockSpec((2 * C - 1, LANES * C), lambda i: (0, 0)),  # coef (resident)
            pl.BlockSpec((1, LANES * keep), lambda i: (0, 0)),       # bias (resident)
            pl.BlockSpec((tr, LANES * C), lambda i: (i, 0)),         # x tile
        ],
        out_specs=pl.BlockSpec((tr, LANES * keep), lambda i: (i, 0)),
        compiler_params=pltpu.CompilerParams(
            dimension_semantics=("parallel",),
            vmem_limit_bytes=32 * 1024 * 1024),
    )(coef, b_packed, x_packed)

    y2d = y_packed.reshape(Mp, keep)
    if Mp != M:
        y2d = y2d[:M]
    return y2d.reshape(B, N, keep)


def init_params(key, input_size=3, output_size=3, hidden_size=10):
    """Deterministic init mirroring nn.Linear's U(-1/sqrt(fan_in), 1/sqrt(fan_in))."""
    k1, k2, k3, k4 = jax.random.split(key, 4)
    bound1 = 1.0 / jnp.sqrt(jnp.float32(input_size))
    bound2 = 1.0 / jnp.sqrt(jnp.float32(hidden_size))
    w1 = jax.random.uniform(k1, (hidden_size, input_size), jnp.float32, -bound1, bound1)
    b1 = jax.random.uniform(k2, (hidden_size,), jnp.float32, -bound1, bound1)
    w2 = jax.random.uniform(k3, (output_size, hidden_size), jnp.float32, -bound2, bound2)
    b2 = jax.random.uniform(k4, (output_size,), jnp.float32, -bound2, bound2)
    # TODO(synk): bn1 (BatchNorm1d) parameters exist in __init__ but are never
    # used in forward(), so they are intentionally not materialized here.
    return w1, b1, w2, b2


def _reference(x, w1, b1, w2, b2):
    B, N, C = x.shape
    x2d = x.reshape(B * N, C)
    ref = (x2d @ w1.T + b1) @ w2.T + b2
    return ref.reshape(B, N, -1)[..., :3]


if __name__ == "__main__":
    key = jax.random.PRNGKey(0)
    kx1, kx2, kx3, kp = jax.random.split(key, 4)

    w1, b1, w2, b2 = init_params(kp, input_size=3, output_size=3, hidden_size=10)

    # 1) Tiny shape straight from the module defaults (M=16 -> tail pad, 1 block).
    x1 = jax.random.normal(kx1, (2, 8, 3), jnp.float32)
    y1 = mlp_forward(x1, w1, b1, w2, b2)
    jax.block_until_ready(y1)
    r1 = _reference(x1, w1, b1, w2, b2)
    assert y1.shape == r1.shape, (y1.shape, r1.shape)
    assert jnp.allclose(y1, r1, atol=1e-4, rtol=1e-4), "mismatch (tiny)"

    # 2) 128-aligned point count with a multi-step grid (no pad, resident coef reuse).
    x2 = jax.random.normal(kx2, (4, 1024, 3), jnp.float32)
    y2 = mlp_forward(x2, w1, b1, w2, b2)
    jax.block_until_ready(y2)
    r2 = _reference(x2, w1, b1, w2, b2)
    assert jnp.allclose(y2, r2, atol=1e-4, rtol=1e-4), "mismatch (aligned, tiled)"

    # 3) Non-aligned point count: exercises the tail pad + a partial last block.
    x3 = jax.random.normal(kx3, (3, 700, 3), jnp.float32)
    y3 = mlp_forward(x3, w1, b1, w2, b2)
    jax.block_until_ready(y3)
    r3 = _reference(x3, w1, b1, w2, b2)
    assert jnp.allclose(y3, r3, atol=1e-4, rtol=1e-4), "mismatch (unaligned, partial block)"

    print("KERNEL_OK")
</pallas_src>

<mosaic_0001>
module attributes {stable_mosaic.version = 11 : i64} {
  func.func @_packed_affine_kernel(%arg0: i32, %arg1: memref<5x384xf32, #tpu.memory_space<vmem>>, %arg2: memref<1x384xf32, #tpu.memory_space<vmem>>, %arg3: memref<1x384xf32, #tpu.memory_space<vmem>>, %arg4: memref<1x384xf32, #tpu.memory_space<vmem>>) attributes {dimension_semantics = [#tpu.dimension_semantics<parallel>], iteration_bounds = array<i64: 1>, scalar_prefetch = 0 : i64, scratch_operands = 0 : i64, tpu.core_type = #tpu.core_type<tc>, window_params = [{pipeline_mode = #tpu.pipeline_mode<synchronous>, transform_indices = @transform_0, window_bounds = array<i64: 5, 384>}, {pipeline_mode = #tpu.pipeline_mode<synchronous>, transform_indices = @transform_1, window_bounds = array<i64: 1, 384>}, {transform_indices = @transform_2, window_bounds = array<i64: 1, 384>}, {transform_indices = @transform_3, window_bounds = array<i64: 1, 384>}]} {
    %c0 = arith.constant 0 : index
    %c0_0 = arith.constant 0 : index
    %0 = vector.load %arg3[%c0, %c0_0] : memref<1x384xf32, #tpu.memory_space<vmem>>, vector<1x384xf32>
    %c2 = arith.constant 2 : index
    %c0_1 = arith.constant 0 : index
    %1 = vector.load %arg1[%c2, %c0_1] : memref<5x384xf32, #tpu.memory_space<vmem>>, vector<1x384xf32>
    %2 = arith.mulf %0, %1 : vector<1x384xf32>
    %c0_2 = arith.constant 0 : index
    %c0_3 = arith.constant 0 : index
    %3 = vector.load %arg2[%c0_2, %c0_3] : memref<1x384xf32, #tpu.memory_space<vmem>>, vector<1x384xf32>
    %4 = arith.addf %2, %3 : vector<1x384xf32>
    %c2_i32 = arith.constant 2 : i32
    %5 = tpu.dynamic_rotate %0 by %c2_i32 dim 1 : vector<1x384xf32>, i32 -> vector<1x384xf32>
    %c0_4 = arith.constant 0 : index
    %c0_5 = arith.constant 0 : index
    %6 = vector.load %arg1[%c0_4, %c0_5] : memref<5x384xf32, #tpu.memory_space<vmem>>, vector<1x384xf32>
    %7 = arith.mulf %5, %6 : vector<1x384xf32>
    %8 = arith.addf %4, %7 : vector<1x384xf32>
    %c1_i32 = arith.constant 1 : i32
    %9 = tpu.dynamic_rotate %0 by %c1_i32 dim 1 : vector<1x384xf32>, i32 -> vector<1x384xf32>
    %c1 = arith.constant 1 : index
    %c0_6 = arith.constant 0 : index
    %10 = vector.load %arg1[%c1, %c0_6] : memref<5x384xf32, #tpu.memory_space<vmem>>, vector<1x384xf32>
    %11 = arith.mulf %9, %10 : vector<1x384xf32>
    %12 = arith.addf %8, %11 : vector<1x384xf32>
    %c383_i32 = arith.constant 383 : i32
    %13 = tpu.dynamic_rotate %0 by %c383_i32 dim 1 : vector<1x384xf32>, i32 -> vector<1x384xf32>
    %c3 = arith.constant 3 : index
    %c0_7 = arith.constant 0 : index
    %14 = vector.load %arg1[%c3, %c0_7] : memref<5x384xf32, #tpu.memory_space<vmem>>, vector<1x384xf32>
    %15 = arith.mulf %13, %14 : vector<1x384xf32>
    %16 = arith.addf %12, %15 : vector<1x384xf32>
    %c382_i32 = arith.constant 382 : i32
    %17 = tpu.dynamic_rotate %0 by %c382_i32 dim 1 : vector<1x384xf32>, i32 -> vector<1x384xf32>
    %c4 = arith.constant 4 : index
    %c0_8 = arith.constant 0 : index
    %18 = vector.load %arg1[%c4, %c0_8] : memref<5x384xf32, #tpu.memory_space<vmem>>, vector<1x384xf32>
    %19 = arith.mulf %17, %18 : vector<1x384xf32>
    %20 = arith.addf %16, %19 : vector<1x384xf32>
    %c0_9 = arith.constant 0 : index
    %c0_10 = arith.constant 0 : index
    %21 = vector.load %arg4[%c0_9, %c0_10] : memref<1x384xf32, #tpu.memory_space<vmem>>, vector<1x384xf32>
    tpu.vector_store %arg4[%c0_9, %c0_10], %20 {strides = array<i32>} : memref<1x384xf32, #tpu.memory_space<vmem>>, vector<1x384xf32>,
    return
  }
  func.func @transform_0(%arg0: i32) -> (i32, i32) {
    %c0_i32 = arith.constant 0 : i32
    %c0_i32_0 = arith.constant 0 : i32
    %c0_i32_1 = arith.constant 0 : i32
    return %c0_i32, %c0_i32_0 : i32, i32
  }
  func.func @transform_1(%arg0: i32) -> (i32, i32) {
    %c0_i32 = arith.constant 0 : i32
    %c0_i32_0 = arith.constant 0 : i32
    %c0_i32_1 = arith.constant 0 : i32
    return %c0_i32, %c0_i32_0 : i32, i32
  }
  func.func @transform_2(%arg0: i32) -> (i32, i32) {
    %c0_i32 = arith.constant 0 : i32
    %c0_i32_0 = arith.constant 0 : i32
    return %arg0, %c0_i32 : i32, i32
  }
  func.func @transform_3(%arg0: i32) -> (i32, i32) {
    %c0_i32 = arith.constant 0 : i32
    %c0_i32_0 = arith.constant 0 : i32
    return %arg0, %c0_i32 : i32, i32
  }
}

</mosaic_0001>

<bundles_post_ra>
// kernel: tpu_custom_call.1
= control target key start
LH: loop header
LB: loop body
LE: loop exit
PB: predicated region body
PF: predicated region fallthrough
CT: control target
= control target key end

     0   :  { %8 = vsyncpa [#allocation3], 0  ;;  %s480_s0 = inlined_call_operand.hbm [shape: f32[5,384], index: 0, kind: input, shape index: {}]   ;;  %s481_s1 = inlined_call_operand.vmem [shape: f32[1,384], index: 1, kind: input, shape index: {}]   ;;  %s482_s2 = inlined_call_operand.vmem [shape: f32[1,384], index: 2, kind: input, shape index: {}]   ;;  %s483_s3 = inlined_call_operand.hbm [shape: f32[1,384], index: 3, kind: output, shape index: {}]  }
   0x1   :  { %9 = vsyncpa [#allocation4], 0  ;;  %s361_s12 = smov [#allocation2]   ;;  %s313_s16 = scalar_lea.hbm %s480_s0, 384 }
   0x2   :  { %s16_s13 = sshll.u32 %s361_s12, 4  ;;  %p314_p0 = scmp.ne.s32.totalorder %s480_s0, %s313_s16  ;;  %s17_s13 = int_to_ptr.vmem [resolvable:$true] %s16_s13 }
   0x3   :  { %p317_p1 = scmp.lt.u32.totalorder %s313_s16, %s480_s0 }
   0x5   :  { %p319_p2 = pnand %p317_p1, %p314_p0 }
   0x7   :  { %322 = shalt.err (!%p319_p2)
}
   0x8   :  { %s323_s21 = scalar_lea.vmem %s17_s13, 384  ;;  %p328_p4 = scmp.lt.s32.totalorder %s17_s13, %s17_s13 }
   0x9   :  { %p324_p3 = scmp.ne.s32.totalorder %s17_s13, %s323_s21  ;;  %p329_p5 = scmp.lt.s32.totalorder %s323_s21, %s323_s21 }
   0xb   :  { %p330_p6 = por %p329_p5, %p328_p4 }
   0xd   :  { %p331_p7 = pnand %p330_p6, %p324_p3 }
   0xf   :  { %334 = shalt.err (!%p331_p7)
}
  0x10   :  { %19 = dma.hbm_to_vmem [thread:$0]  %s480_s0, 384, %s17_s13, [#allocation3]  }
  0x11   :  { %357 = dma.done.wait [#allocation3], 384  }
  0x12   :  { %358 = vsyncadd [#allocation3], 4294966912  ;;  %v34_v0 = vlaneseq  ;;  %v27_v5 = vld [vmem:[%s482_s2] sm:$0x7]  ;;  %s362_s0 = smov 2   ;;  %s363_s26 = smov 1  }
  0x13   :  { %s364_s27 = smov 127   ;;  %s365_s28 = smov 126   ;;  %v61_v10 = vld [vmem:[#allocation2] ss:$8 sm:$0x7] }
  0x14   :  { %v35_v1 = vshrl.u32 %v34_v0, 7  ;;  %v414_v9 = vand.u32 127, %v34_v0  ;;  %v366_v11 = vmov 1966171168   ;;  %v31_v39 = vld [vmem:[%s481_s1] sm:$0x7] }
  0x15   :  { %v86_v12 = vunpack.c.l.s4 %v366_v11  ;;  %v120_v21 = vld [vmem:[#allocation2 + $0x1] ss:$8 sm:$0x7]  ;;  %v29_v25 = vld [vmem:[#allocation2 + $0x2] ss:$8 sm:$0x7] }
  0x16   :  { %v401_v2 = vsub.s32 2, %v35_v1  ;;  %v403_v3 = vsub.s32 0, %v35_v1  ;;  %v405_v4 = vsub.s32 1, %v35_v1  ;;  %vm57_vm0 = vcmp.lt.s32.totalorder %v414_v9, 2  ;;  %s367_s1 = smov [#allocation5]  }
  0x17   :  { %v87_v14 = vunpack.c.0.s8 %v86_v12  ;;  %vm115_vm1 = vcmp.lt.s32.totalorder %v414_v9, 1  ;;  %v179_v33 = vld [vmem:[#allocation2 + $0x3] ss:$8 sm:$0x7]  ;;  %v30_v34 = vmul.f32 %v29_v25, %v27_v5  ;;  %vm174_vm2 = vcmp.lt.s32.totalorder %v414_v9, 127  ;;  %s297_s30 = sshll.u32 %s367_s1, 4  ;;  %s298_s30 = int_to_ptr.vmem [resolvable:$true] %s297_s30 }
  0x18   :  { %v45_v6 = vrot.slane %v27_v5, %v401_v2  ;;  %v37_v7 = vrot.slane %v27_v5, %v403_v3  ;;  %v41_v8 = vrot.slane %v27_v5, %v405_v4  ;;  %v66_v13 = vrot.slane %v61_v10, %v403_v3  ;;  %v238_v60 = vld [vmem:[#allocation2 + $0x4] ss:$8 sm:$0x7]  ;;  %s335_s4 = scalar_lea.vmem %s298_s30, 48  ;;  %s339_s5 = scalar_lea.vmem %s298_s30, 64 }
  0x19   :  { %v70_v19 = vrot.slane %v61_v10, %v405_v4  ;;  %v74_v20 = vrot.slane %v61_v10, %v401_v2  ;;  %v420_v22 = vsub.s32 %v87_v14, %v35_v1  ;;  %v125_v28 = vrot.slane %v120_v21, %v403_v3  ;;  %p336_p8 = scmp.ne.s32.totalorder %s298_s30, %s335_s4  ;;  %p340_p9 = scmp.lt.s32.totalorder %s298_s30, %s298_s30 }
  0x1a   :  { %53 = vrot.lane.b32.xlu1 %v45_v6, %s362_s0  ;;  %49 = vrot.lane.b32.xlu0 %v37_v7, %s362_s0  ;;  %v129_v31 = vrot.slane %v120_v21, %v405_v4  ;;  %v133_v32 = vrot.slane %v120_v21, %v401_v2  ;;  %v184_v43 = vrot.slane %v179_v33, %v403_v3  ;;  %vm233_vm3 = vcmp.lt.s32.totalorder %v414_v9, 126  ;;  %p341_p10 = scmp.lt.s32.totalorder %s339_s5, %s335_s4 }
  0x1b   :  { %v32_v48 = vadd.f32 %v31_v39, %v30_v34  ;;  %v188_v55 = vrot.slane %v179_v33, %v405_v4  ;;  %v192_v59 = vrot.slane %v179_v33, %v401_v2  ;;  %vm288_vm4 = vcmp.lt.s32.totalorder %v34_v0, 384 }
  0x1c   :  { %p342_p11 = por %p341_p10, %p340_p9 }
  0x1e   :  { %109 = vrot.lane.b32.xlu1 %v37_v7, %s363_s26  ;;  %51 = vrot.lane.b32.xlu0 %v41_v8, %s362_s0  ;;  %p343_p12 = pnand %p342_p11, %p336_p8 }
  0x22   :  { %113 = vrot.lane.b32.xlu1 %v45_v6, %s363_s26  ;;  %111 = vrot.lane.b32.xlu0 %v41_v8, %s363_s26 }
  0x26   :  { %170 = vrot.lane.b32.xlu1 %v41_v8, %s364_s27  ;;  %168 = vrot.lane.b32.xlu0 %v37_v7, %s364_s27 }
  0x2a   :  { %227 = vrot.lane.b32.xlu1 %v37_v7, %s365_s28  ;;  %172 = vrot.lane.b32.xlu0 %v45_v6, %s364_s27  ;;  %v251_v7 = vrot.slane %v238_v60, %v401_v2 }
  0x2e   :  { %231 = vrot.lane.b32.xlu1 %v45_v6, %s365_s28  ;;  %229 = vrot.lane.b32.xlu0 %v41_v8, %s365_s28  ;;  %v243_v8 = vrot.slane %v238_v60, %v403_v3 }
  0x8c   :  { %v54_v15 = vpop.permute.xlu1 %53  ;;  %v50_v16 = vpop.permute.xlu0 %49 }
  0x8d   :  { %v60_v17 = vsel %vm57_vm0, %v54_v15, %v50_v16 }
  0x8e   :  { %v78_v18 = vmul.f32 %v66_v13, %v60_v17  ;;  %v247_v13 = vrot.slane %v238_v60, %v405_v4 }
  0x90   :  { %v110_v23 = vpop.permute.xlu1 %109  ;;  %v52_v24 = vpop.permute.xlu0 %51 }
  0x91   :  { %v58_v26 = vsel %vm57_vm0, %v52_v24, %v54_v15  ;;  %v59_v27 = vsel %vm57_vm0, %v50_v16, %v52_v24 }
  0x92   :  { %v79_v29 = vmul.f32 %v70_v19, %v59_v27  ;;  %v80_v30 = vmul.f32 %v74_v20, %v58_v26 }
  0x94   :  { %v84_v35 = vcombine.low %v78_v18, %v79_v29  ;;  %v98_v36 = vrot.slane %v80_v30, %v420_v22  ;;  %v114_v37 = vpop.permute.xlu1 %113  ;;  %v112_v38 = vpop.permute.xlu0 %111 }
  0x95   :  { %v118_v40 = vsel %vm115_vm1, %v114_v37, %v110_v23  ;;  %v116_v41 = vsel %vm115_vm1, %v112_v38, %v114_v37  ;;  %v117_v42 = vsel %vm115_vm1, %v110_v23, %v112_v38 }
  0x96   :  { %v91_v44 = vrot.slane %v84_v35, %v420_v22  ;;  %v137_v45 = vmul.f32 %v125_v28, %v118_v40  ;;  %v138_v46 = vmul.f32 %v129_v31, %v117_v42  ;;  %v139_v47 = vmul.f32 %v133_v32, %v116_v41 }
  0x98   :  { %v99_v49 = vcombine.low %v91_v44, %v98_v36  ;;  %v143_v50 = vcombine.low %v137_v45, %v138_v46  ;;  %v157_v51 = vrot.slane %v139_v47, %v420_v22  ;;  %v171_v52 = vpop.permute.xlu1 %170  ;;  %v169_v53 = vpop.permute.xlu0 %168 }
  0x99   :  { %v176_v54 = vsel %vm174_vm2, %v169_v53, %v171_v52 }
  0x9a   :  { %v106_v56 = vrot.slane %v99_v49, %v420_v22  ;;  %v150_v57 = vrot.slane %v143_v50, %v420_v22  ;;  %v196_v58 = vmul.f32 %v184_v43, %v176_v54 }
  0x9c   :  { %v108_v61 = vadd.f32 %v106_v56, %v32_v48  ;;  %v158_v62 = vcombine.low %v150_v57, %v157_v51  ;;  %v228_v63 = vpop.permute.xlu1 %227  ;;  %v173_v1 = vpop.permute.xlu0 %172 }
  0x9d   :  { %v175_v5 = vsel %vm174_vm2, %v171_v52, %v173_v1  ;;  %v177_v6 = vsel %vm174_vm2, %v173_v1, %v169_v53 }
  0x9e   :  { %v165_v10 = vrot.slane %v158_v62, %v420_v22  ;;  %v197_v11 = vmul.f32 %v188_v55, %v175_v5  ;;  %v198_v12 = vmul.f32 %v192_v59, %v177_v6 }
  0xa0   :  { %v202_v14 = vcombine.low %v196_v58, %v197_v11  ;;  %v216_v15 = vrot.slane %v198_v12, %v420_v22  ;;  %v232_v16 = vpop.permute.xlu1 %231  ;;  %v230_v17 = vpop.permute.xlu0 %229  ;;  %v167_v18 = vadd.f32 %v165_v10, %v108_v61 }
  0xa1   :  { %v236_v19 = vsel %vm233_vm3, %v232_v16, %v228_v63  ;;  %v234_v2 = vsel %vm233_vm3, %v230_v17, %v232_v16  ;;  %v235_v3 = vsel %vm233_vm3, %v228_v63, %v230_v17 }
  0xa2   :  { %v209_v20 = vrot.slane %v202_v14, %v420_v22  ;;  %v257_v21 = vmul.f32 %v251_v7, %v236_v19  ;;  %v255_v23 = vmul.f32 %v243_v8, %v235_v3  ;;  %v256_v4 = vmul.f32 %v247_v13, %v234_v2 }
  0xa4   :  { %v217_v24 = vcombine.low %v209_v20, %v216_v15  ;;  %v275_v25 = vrot.slane %v257_v21, %v420_v22  ;;  %v261_v26 = vcombine.low %v255_v23, %v256_v4 }
  0xa6   :  { %v224_v27 = vrot.slane %v217_v24, %v420_v22  ;;  %v268_v28 = vrot.slane %v261_v26, %v420_v22 }
  0xa8   :  { %v276_v29 = vcombine.low %v268_v28, %v275_v25  ;;  %v226_v30 = vadd.f32 %v224_v27, %v167_v18 }
  0xaa   :  { %v283_v9 = vrot.slane %v276_v29, %v420_v22 }
  0xac   :  { %v285_v31 = vadd.f32 %v283_v9, %v226_v30 }
  0xae   :  { %290 = vst.msk [vmem:[#allocation5] sm:$0x7] %vm288_vm4, %v285_v31 }
  0xaf   :  { %346 = shalt.err (!%p343_p12)
}
  0xb0   :  { %s347_s8 = scalar_lea.hbm %s483_s3, 48 }
  0xb1   :  { %p348_p13 = scmp.ne.s32.totalorder %s483_s3, %s347_s8  ;;  %p351_p0 = scmp.lt.u32.totalorder %s347_s8, %s483_s3 }
  0xb3   :  { %p353_p1 = pnand %p351_p0, %p348_p13 }
  0xb5   :  { %356 = shalt.err (!%p353_p1)
}
  0xb6   :  { %300 = dma.vmem_to_hbm [thread:$0]  %s298_s30, 48, %s483_s3, [#allocation4]  }
  0xb7   :  { %359 = dma.done.wait [#allocation4], 48  }
  0xb8   :  { %360 = vsyncadd [#allocation4], 4294967248 }
  0xb9   :  { %304 = vsyncpa [#allocation3], 1 }
  0xba   :  { %305 = vsyncpa [#allocation4], 1 }

</bundles_post_ra>
